<compile_context>
chip_gen: v7x
topology: tpu7x:2x2x1
jax: 0.10.0
libtpu: 0.0.40
codegen_flags: <defaults>
</compile_context>

<pallas_src>
import functools

import jax
import jax.numpy as jnp
from jax.experimental import pallas as pl
from jax.experimental.pallas import tpu as pltpu


def _round_up(x: int, m: int) -> int:
    return ((x + m - 1) // m) * m


def _auto_edge_tile(in_feat: int, stream_itemsize: int) -> int:
    """F-adaptive edge tile, sized against a ~32 MiB tile-VMEM budget."""
    # Tile-dependent VMEM per edge (bytes):
    #   2 streams (h_src, h_dst) x 2 pipeline buffers x F x itemsize
    # + ~3 x F x 4  (f32 intermediates: two matmul partials + relu result)
    # + ~2 x 4      (double-buffered lane-dense output block)
    per_edge = 4 * in_feat * stream_itemsize + 12 * in_feat + 8
    # Fixed VMEM: resident W1a/W1b (double-buffered by default) + small vectors.
    fixed = 16 * in_feat * in_feat + 4096
    budget = 32 * 1024 * 1024
    et = max(128, (budget - fixed) // per_edge)
    et = min(et, 8192)          # >= ~10x the per-step overhead already at F=32
    return max(128, (et // 128) * 128)


def _mlp_edge_kernel(hs_ref, hd_ref, w1a_ref, w1b_ref, b1_ref, w2_ref, b2_ref,
                     o_ref):
    # hs_ref, hd_ref : [TE, F]  gathered src/dst node features for this tile
    # w1a_ref, w1b_ref: [F, F]  split first-layer weight (W1 = [W1a; W1b])
    # b1_ref         : [1, F]
    # w2_ref         : [1, F]   second-layer weight as a row vector (w2^T)
    # b2_ref         : [1, 1]
    # o_ref          : [1, TE]  scores, edges on the lane axis (lane-dense)
    h = jnp.dot(hs_ref[...], w1a_ref[...], preferred_element_type=jnp.float32)
    h = h + jnp.dot(hd_ref[...], w1b_ref[...],
                    preferred_element_type=jnp.float32)
    h = jnp.maximum(h + b1_ref[...], 0.0)                       # [TE, F] f32

    # Transposed second stage: contract w2^T (1,F) with h (TE,F) over F so the
    # result is (1, TE) with edges on the lane axis (lane-dense stores).
    s = jax.lax.dot_general(
        w2_ref[...], h,
        dimension_numbers=(((1,), (1,)), ((), ())),
        preferred_element_type=jnp.float32)                     # [1, TE]
    o_ref[...] = (s + b2_ref[...]).astype(o_ref.dtype)


@functools.partial(jax.jit, static_argnames=("edge_tile", "bf16_streams"))
def mlp_prediction_forward(src_idx, dst_idx, feature, w1, b1, w2, b2,
                           edge_tile=None, bf16_streams: bool = False):
    """Pallas implementation of MLPPrediction.forward.

    Args:
      src_idx, dst_idx: int32 [E] edge endpoints.
      feature:          f32   [N, F] node features.
      w1: [2F, F] (= torch liner1.weight.T), b1: [F],
      w2: [F, 1]  (= torch liner2.weight.T), b2: [1]
      edge_tile: optional explicit edges-per-grid-step (multiple of 128);
        default picks an F-adaptive, VMEM-aware tile.
      bf16_streams: stream the gathered features in bf16 (halves HBM traffic);
        off by default for strict torch-float32 parity.
    Returns:
      scores: f32 [E, 1]
    """
    in_feat = feature.shape[-1]
    num_edges = src_idx.shape[0]
    out_dtype = feature.dtype

    if num_edges == 0:
        return jnp.zeros((0, 1), out_dtype)

    stream_dtype = jnp.bfloat16 if bf16_streams else feature.dtype
    itemsize = jnp.dtype(stream_dtype).itemsize

    # Pad only the (tiny) index vectors to a 128-aligned edge count; the
    # gather then writes the padded [E_pad, F] layout directly (no extra
    # HBM round trip of the feature streams).  Padded rows gather node 0 and
    # their scores are discarded by the final slice.
    e_pad = _round_up(num_edges, 128)
    if e_pad != num_edges:
        src_idx = jnp.pad(src_idx, (0, e_pad - num_edges))
        dst_idx = jnp.pad(dst_idx, (0, e_pad - num_edges))

    # Glue (DGL apply_edges): gather the endpoint features.
    h_src = jnp.take(feature, src_idx, axis=0).astype(stream_dtype)  # [E_pad,F]
    h_dst = jnp.take(feature, dst_idx, axis=0).astype(stream_dtype)  # [E_pad,F]

    # Edge tile: large (amortize ~0.35 us/step overhead), VMEM-aware, clamped
    # for tiny edge sets, and split so >= 2 grid steps feed both v7x cores.
    if edge_tile is None:
        et = _auto_edge_tile(in_feat, itemsize)
    else:
        assert edge_tile % 128 == 0
        et = edge_tile
    et = min(et, e_pad)
    if e_pad > 128 and pl.cdiv(e_pad, et) < 2:
        et = _round_up(pl.cdiv(e_pad, 2), 128)
    num_blocks = pl.cdiv(e_pad, et)

    w1a = w1[:in_feat]                        # [F, F]
    w1b = w1[in_feat:]                        # [F, F]
    b1_2d = b1.reshape(1, in_feat)            # [1, F]
    w2_row = w2.reshape(1, in_feat)           # [1, F]  (w2^T)
    b2_2d = b2.reshape(1, 1)                  # [1, 1]

    cost = pl.CostEstimate(
        flops=4 * num_edges * in_feat * in_feat + 2 * num_edges * in_feat,
        transcendentals=0,
        bytes_accessed=(2 * num_edges * in_feat * itemsize
                        + num_edges * jnp.dtype(out_dtype).itemsize
                        + (2 * in_feat * in_feat + 2 * in_feat + 1) * 4),
    )

    scores = pl.pallas_call(
        _mlp_edge_kernel,
        out_shape=jax.ShapeDtypeStruct((1, e_pad), out_dtype),
        grid_spec=pltpu.PrefetchScalarGridSpec(
            num_scalar_prefetch=0,
            grid=(num_blocks,),
            in_specs=[
                pl.BlockSpec((et, in_feat), lambda i: (i, 0)),        # h_src
                pl.BlockSpec((et, in_feat), lambda i: (i, 0)),        # h_dst
                pl.BlockSpec((in_feat, in_feat), lambda i: (0, 0)),   # W1a
                pl.BlockSpec((in_feat, in_feat), lambda i: (0, 0)),   # W1b
                pl.BlockSpec((1, in_feat), lambda i: (0, 0)),         # b1
                pl.BlockSpec((1, in_feat), lambda i: (0, 0)),         # w2^T
                pl.BlockSpec((1, 1), lambda i: (0, 0)),               # b2
            ],
            out_specs=pl.BlockSpec((1, et), lambda i: (0, i)),        # scores
        ),
        compiler_params=pltpu.CompilerParams(
            dimension_semantics=("parallel",),
            vmem_limit_bytes=48 * 1024 * 1024,
        ),
        cost_estimate=cost,
    )(h_src, h_dst, w1a, w1b, b1_2d, w2_row, b2_2d)

    # [1, e_pad] (lane-dense) -> [E, 1]
    return scores.reshape(e_pad, 1)[:num_edges]


def _reference(src_idx, dst_idx, feature, w1, b1, w2, b2):
    x = jnp.concatenate([feature[src_idx], feature[dst_idx]], axis=1)
    h = jnp.maximum(x @ w1 + b1, 0.0)
    return h @ w2 + b2


if __name__ == "__main__":
    key = jax.random.PRNGKey(0)
    k_feat, k_w1, k_b1, k_w2, k_b2, k_src, k_dst = jax.random.split(key, 7)

    in_feat = 32          # F
    num_nodes = 6         # N
    num_edges = 16        # E

    feature = jax.random.normal(k_feat, (num_nodes, in_feat), dtype=jnp.float32)
    src_idx = jax.random.randint(k_src, (num_edges,), 0, num_nodes, dtype=jnp.int32)
    dst_idx = jax.random.randint(k_dst, (num_edges,), 0, num_nodes, dtype=jnp.int32)

    # Deterministic parameter init (mimics nn.Linear uniform fan-in scaling).
    lim1 = 1.0 / jnp.sqrt(2.0 * in_feat)
    lim2 = 1.0 / jnp.sqrt(1.0 * in_feat)
    w1 = jax.random.uniform(k_w1, (2 * in_feat, in_feat), jnp.float32, -lim1, lim1)
    b1 = jax.random.uniform(k_b1, (in_feat,), jnp.float32, -lim1, lim1)
    w2 = jax.random.uniform(k_w2, (in_feat, 1), jnp.float32, -lim2, lim2)
    b2 = jax.random.uniform(k_b2, (1,), jnp.float32, -lim2, lim2)

    out = mlp_prediction_forward(src_idx, dst_idx, feature, w1, b1, w2, b2)
    out = jax.block_until_ready(out)

    ref = _reference(src_idx, dst_idx, feature, w1, b1, w2, b2)
    assert out.shape == (num_edges, 1), out.shape
    # Tolerance absorbs TPU default matmul-precision noise and the reordered
    # contraction (split W1 + transposed second stage); typical error ~1e-6.
    assert jnp.allclose(out, ref, atol=5e-4, rtol=5e-4), "mismatch vs reference"

    print("KERNEL_OK")
</pallas_src>

<mosaic_0001>
module attributes {stable_mosaic.version = 11 : i64} {
  func.func @_mlp_edge_kernel(%arg0: i32, %arg1: memref<128x32xf32, #tpu.memory_space<vmem>>, %arg2: memref<128x32xf32, #tpu.memory_space<vmem>>, %arg3: memref<32x32xf32, #tpu.memory_space<vmem>>, %arg4: memref<32x32xf32, #tpu.memory_space<vmem>>, %arg5: memref<1x32xf32, #tpu.memory_space<vmem>>, %arg6: memref<1x32xf32, #tpu.memory_space<vmem>>, %arg7: memref<1x1xf32, #tpu.memory_space<vmem>>, %arg8: memref<1x128xf32, #tpu.memory_space<vmem>>) attributes {dimension_semantics = [#tpu.dimension_semantics<parallel>], iteration_bounds = array<i64: 1>, scalar_prefetch = 0 : i64, scratch_operands = 0 : i64, tpu.core_type = #tpu.core_type<tc>, window_params = [{transform_indices = @transform_0, window_bounds = array<i64: 128, 32>}, {transform_indices = @transform_1, window_bounds = array<i64: 128, 32>}, {pipeline_mode = #tpu.pipeline_mode<synchronous>, transform_indices = @transform_2, window_bounds = array<i64: 32, 32>}, {pipeline_mode = #tpu.pipeline_mode<synchronous>, transform_indices = @transform_3, window_bounds = array<i64: 32, 32>}, {pipeline_mode = #tpu.pipeline_mode<synchronous>, transform_indices = @transform_4, window_bounds = array<i64: 1, 32>}, {pipeline_mode = #tpu.pipeline_mode<synchronous>, transform_indices = @transform_5, window_bounds = array<i64: 1, 32>}, {pipeline_mode = #tpu.pipeline_mode<synchronous>, transform_indices = @transform_6, window_bounds = array<i64: 1, 1>}, {transform_indices = @transform_7, window_bounds = array<i64: 1, 128>}]} {
    %c0 = arith.constant 0 : index
    %c0_0 = arith.constant 0 : index
    %0 = vector.load %arg1[%c0, %c0_0] : memref<128x32xf32, #tpu.memory_space<vmem>>, vector<128x32xf32>
    %c0_1 = arith.constant 0 : index
    %c0_2 = arith.constant 0 : index
    %1 = vector.load %arg3[%c0_1, %c0_2] : memref<32x32xf32, #tpu.memory_space<vmem>>, vector<32x32xf32>
    %cst = arith.constant dense<0.000000e+00> : vector<128x32xf32>
    %2 = tpu.matmul %0, %1, %cst {dimension_numbers = #tpu.dot_dimension_numbers<[1], [0], [0], [1], [0, 0, 1, 1], [], []>} : vector<128x32xf32>, vector<32x32xf32>, vector<128x32xf32> -> vector<128x32xf32>
    %c0_3 = arith.constant 0 : index
    %c0_4 = arith.constant 0 : index
    %3 = vector.load %arg2[%c0_3, %c0_4] : memref<128x32xf32, #tpu.memory_space<vmem>>, vector<128x32xf32>
    %c0_5 = arith.constant 0 : index
    %c0_6 = arith.constant 0 : index
    %4 = vector.load %arg4[%c0_5, %c0_6] : memref<32x32xf32, #tpu.memory_space<vmem>>, vector<32x32xf32>
    %cst_7 = arith.constant dense<0.000000e+00> : vector<128x32xf32>
    %5 = tpu.matmul %3, %4, %cst_7 {dimension_numbers = #tpu.dot_dimension_numbers<[1], [0], [0], [1], [0, 0, 1, 1], [], []>} : vector<128x32xf32>, vector<32x32xf32>, vector<128x32xf32> -> vector<128x32xf32>
    %6 = arith.addf %2, %5 : vector<128x32xf32>
    %c0_8 = arith.constant 0 : index
    %c0_9 = arith.constant 0 : index
    %7 = vector.load %arg5[%c0_8, %c0_9] : memref<1x32xf32, #tpu.memory_space<vmem>>, vector<1x32xf32>
    %8 = vector.broadcast %7 : vector<1x32xf32> to vector<128x32xf32>
    %9 = arith.addf %6, %8 : vector<128x32xf32>
    %cst_10 = arith.constant 0.000000e+00 : f32
    %10 = vector.broadcast %cst_10 : f32 to vector<128x32xf32>
    %11 = arith.maximumf %9, %10 : vector<128x32xf32>
    %c0_11 = arith.constant 0 : index
    %c0_12 = arith.constant 0 : index
    %12 = vector.load %arg6[%c0_11, %c0_12] : memref<1x32xf32, #tpu.memory_space<vmem>>, vector<1x32xf32>
    %cst_13 = arith.constant dense<0.000000e+00> : vector<1x128xf32>
    %13 = tpu.matmul %12, %11, %cst_13 {dimension_numbers = #tpu.dot_dimension_numbers<[1], [1], [0], [0], [0, 0, 1, 0], [], []>} : vector<1x32xf32>, vector<128x32xf32>, vector<1x128xf32> -> vector<1x128xf32>
    %c0_14 = arith.constant 0 : index
    %c0_15 = arith.constant 0 : index
    %14 = vector.load %arg7[%c0_14, %c0_15] : memref<1x1xf32, #tpu.memory_space<vmem>>, vector<1x1xf32>
    %15 = vector.broadcast %14 : vector<1x1xf32> to vector<1x128xf32>
    %16 = arith.addf %13, %15 : vector<1x128xf32>
    %c0_16 = arith.constant 0 : index
    %c0_17 = arith.constant 0 : index
    %17 = vector.load %arg8[%c0_16, %c0_17] : memref<1x128xf32, #tpu.memory_space<vmem>>, vector<1x128xf32>
    tpu.vector_store %arg8[%c0_16, %c0_17], %16 {strides = array<i32>} : memref<1x128xf32, #tpu.memory_space<vmem>>, vector<1x128xf32>,
    return
  }
  func.func @transform_0(%arg0: i32) -> (i32, i32) {
    %c0_i32 = arith.constant 0 : i32
    %c0_i32_0 = arith.constant 0 : i32
    return %arg0, %c0_i32 : i32, i32
  }
  func.func @transform_1(%arg0: i32) -> (i32, i32) {
    %c0_i32 = arith.constant 0 : i32
    %c0_i32_0 = arith.constant 0 : i32
    return %arg0, %c0_i32 : i32, i32
  }
  func.func @transform_2(%arg0: i32) -> (i32, i32) {
    %c0_i32 = arith.constant 0 : i32
    %c0_i32_0 = arith.constant 0 : i32
    %c0_i32_1 = arith.constant 0 : i32
    return %c0_i32, %c0_i32_0 : i32, i32
  }
  func.func @transform_3(%arg0: i32) -> (i32, i32) {
    %c0_i32 = arith.constant 0 : i32
    %c0_i32_0 = arith.constant 0 : i32
    %c0_i32_1 = arith.constant 0 : i32
    return %c0_i32, %c0_i32_0 : i32, i32
  }
  func.func @transform_4(%arg0: i32) -> (i32, i32) {
    %c0_i32 = arith.constant 0 : i32
    %c0_i32_0 = arith.constant 0 : i32
    %c0_i32_1 = arith.constant 0 : i32
    return %c0_i32, %c0_i32_0 : i32, i32
  }
  func.func @transform_5(%arg0: i32) -> (i32, i32) {
    %c0_i32 = arith.constant 0 : i32
    %c0_i32_0 = arith.constant 0 : i32
    %c0_i32_1 = arith.constant 0 : i32
    return %c0_i32, %c0_i32_0 : i32, i32
  }
  func.func @transform_6(%arg0: i32) -> (i32, i32) {
    %c0_i32 = arith.constant 0 : i32
    %c0_i32_0 = arith.constant 0 : i32
    %c0_i32_1 = arith.constant 0 : i32
    return %c0_i32, %c0_i32_0 : i32, i32
  }
  func.func @transform_7(%arg0: i32) -> (i32, i32) {
    %c0_i32 = arith.constant 0 : i32
    %c0_i32_0 = arith.constant 0 : i32
    return %c0_i32, %arg0 : i32, i32
  }
}

</mosaic_0001>

<bundles_post_ra>
// kernel: mlp_prediction_forward.1
= control target key start
LH: loop header
LB: loop body
LE: loop exit
PB: predicated region body
PF: predicated region fallthrough
CT: control target
= control target key end

     0   :  { %vm68_vm0 = vcmask 261120   ;;  %v906_v44 = vmov 0.0|0.0   ;;  %vm907_vm1 = vmmov 0   ;;  %v908_v45 = vmov 0.0   ;;  %s1145_s3 = inlined_call_operand.vmem [shape: f32[32,32], index: 3, kind: input, shape index: {}]   ;;  %s1146_s1 = inlined_call_operand.vmem [shape: f32[128,32], index: 1, kind: input, shape index: {}]   ;;  %s1147_s2 = inlined_call_operand.vmem [shape: f32[32,32], index: 2, kind: input, shape index: {}]   ;;  %s1148_s0 = inlined_call_operand.vmem [shape: f32[128,32], index: 0, kind: input, shape index: {}]   ;;  %s1149_s6 = inlined_call_operand.<no memory space> [shape: f32[1,1], index: 6, kind: input, shape index: {}]   ;;  %s1150_s4 = inlined_call_operand.vmem [shape: f32[1,32], index: 4, kind: input, shape index: {}]   ;;  %s1151_s5 = inlined_call_operand.vmem [shape: f32[1,32], index: 5, kind: input, shape index: {}]   ;;  %s1152_s7 = inlined_call_operand.vmem [shape: f32[1,128], index: 7, kind: output, shape index: {}]  }
   0x1   :  { %v64_v0 = vld [vmem:[%s1145_s3] sm:$0xff]  ;;  %v65_v1 = vld [vmem:[%s1145_s3 + $0x8] sm:$0xff]  ;;  %v66_v2 = vld [vmem:[%s1145_s3 + $0x10] sm:$0xff]  ;;  %853 = vmatprep.subr.bf16.mxu1 %v906_v44  ;;  %834 = vmatprep.mubr.msk.f32.mxu1 %vm907_vm1, %v908_v45  ;;  %v909_v46 = vmov 0   ;;  %v12_v47 = vstv %s1149_s6  ;;  %v501_v45 = vlaneseq }
   0x2   :  { %v837_v3 = vpack.c.bf16 %v65_v1, %v64_v0  ;;  %v67_v4 = vld [vmem:[%s1145_s3 + $0x18] sm:$0xff]  ;;  %v48_v5 = vld [vmem:[%s1146_s1] sm:$0xff]  ;;  %v45_v8 = vld [vmem:[%s1147_s2 + $0x8] sm:$0xff]  ;;  %905 = vset.pattern.permute.xlu0 %v909_v46  ;;  %13 = vst [vmem:[#allocation2] sm:$0x1] %v12_v47 }
   0x3   :  { %v841_v6 = vpack.c.bf16 %v67_v4, %v66_v2  ;;  %746 = vmatprep.mubr.msk.f32.mxu0 %vm68_vm0, %v48_v5  ;;  %v44_v7 = vld [vmem:[%s1147_s2] sm:$0xff]  ;;  %v46_v10 = vld [vmem:[%s1147_s2 + $0x10] sm:$0xff]  ;;  %v47_v11 = vld [vmem:[%s1147_s2 + $0x18] sm:$0xff]  ;;  %v502_v46 = vshrl.u32 %v501_v45, 7 }
   0x4   :  { %838 = vmatprep.subr.bf16.mxu0 %v837_v3  ;;  %v845_v9 = vpack.c.bf16 %v45_v8, %v44_v7  ;;  %v49_v12 = vld [vmem:[%s1146_s1 + $0x8] sm:$0xff]  ;;  %v50_v13 = vld [vmem:[%s1146_s1 + $0x10] sm:$0xff]  ;;  %v849_v14 = vpack.c.bf16 %v47_v11, %v46_v10  ;;  %v51_v15 = vld [vmem:[%s1146_s1 + $0x18] sm:$0xff] }
   0x5   :  { %840 = vmatpush3.bf16.msra.mxu0 %v837_v3  ;;  %v52_v16 = vld [vmem:[%s1146_s1 + $0x20] sm:$0xff]  ;;  %v53_v17 = vld [vmem:[%s1146_s1 + $0x28] sm:$0xff]  ;;  %v54_v18 = vld [vmem:[%s1146_s1 + $0x30] sm:$0xff]  ;;  %v503_v47 = vsub.s32 0, %v502_v46 }
   0x6   :  { %842 = vmatprep.subr.bf16.mxu0 %v841_v6  ;;  %v55_v19 = vld [vmem:[%s1146_s1 + $0x38] sm:$0xff]  ;;  %v56_v20 = vld [vmem:[%s1146_s1 + $0x40] sm:$0xff]  ;;  %v57_v21 = vld [vmem:[%s1146_s1 + $0x48] sm:$0xff] }
   0x7   :  { %v58_v22 = vld [vmem:[%s1146_s1 + $0x50] sm:$0xff]  ;;  %v59_v23 = vld [vmem:[%s1146_s1 + $0x58] sm:$0xff]  ;;  %v60_v24 = vld [vmem:[%s1146_s1 + $0x60] sm:$0xff] }
   0x8   :  { %v61_v25 = vld [vmem:[%s1146_s1 + $0x68] sm:$0xff]  ;;  %v62_v26 = vld [vmem:[%s1146_s1 + $0x70] sm:$0xff]  ;;  %v63_v27 = vld [vmem:[%s1146_s1 + $0x78] sm:$0xff] }
   0x9   :  { %844 = vmatpush3.bf16.msra.mxu0 %v841_v6  ;;  %v28_v28 = vld [vmem:[%s1148_s0] sm:$0xff]  ;;  %v29_v29 = vld [vmem:[%s1148_s0 + $0x8] sm:$0xff]  ;;  %v30_v30 = vld [vmem:[%s1148_s0 + $0x10] sm:$0xff] }
   0xa   :  { %846 = vmatprep.subr.bf16.mxu0 %v845_v9  ;;  %v31_v31 = vld [vmem:[%s1148_s0 + $0x18] sm:$0xff]  ;;  %v32_v32 = vld [vmem:[%s1148_s0 + $0x20] sm:$0xff]  ;;  %v33_v33 = vld [vmem:[%s1148_s0 + $0x28] sm:$0xff] }
   0xb   :  { %v34_v34 = vld [vmem:[%s1148_s0 + $0x30] sm:$0xff]  ;;  %v35_v35 = vld [vmem:[%s1148_s0 + $0x38] sm:$0xff]  ;;  %v36_v36 = vld [vmem:[%s1148_s0 + $0x40] sm:$0xff] }
   0xc   :  { %747 = vmatmul.mubr.msk.f32.vlgmr.msra.gmra.mrb[0].mxu0 %vm68_vm0, %v49_v12  ;;  %v37_v37 = vld [vmem:[%s1148_s0 + $0x48] sm:$0xff]  ;;  %v38_v38 = vld [vmem:[%s1148_s0 + $0x50] sm:$0xff]  ;;  %v39_v39 = vld [vmem:[%s1148_s0 + $0x58] sm:$0xff] }
   0xd   :  { %848 = vmatpush3.bf16.msra.mxu0 %v845_v9  ;;  %749 = vmatprep.mubr.msk.f32.mxu0 %vm68_vm0, %v50_v13  ;;  %v40_v40 = vld [vmem:[%s1148_s0 + $0x60] sm:$0xff]  ;;  %v41_v41 = vld [vmem:[%s1148_s0 + $0x68] sm:$0xff]  ;;  %v42_v42 = vld [vmem:[%s1148_s0 + $0x70] sm:$0xff] }
   0xe   :  { %850 = vmatprep.subr.bf16.mxu0 %v849_v14  ;;  %v43_v43 = vld [vmem:[%s1148_s0 + $0x78] sm:$0xff]  ;;  %v495_v48 = vld [vmem:[#allocation2] sm:$0x1]  ;;  %vm1111_vm2 = vmpackc.low %vm68_vm0, %vm68_vm0 }
   0xf   :  { %498 = vperm.xlu0 %905, %v495_v48   ;;  %v663_v49 = vld [vmem:[%s1150_s4] ss:$0 sm:$0xff] }
  0x10   :  { %750 = vmatmul.mubr.msk.f32.gmra.mrb[2].mxu0 %vm68_vm0, %v51_v15 }
  0x11   :  { %752 = vmatprep.mubr.msk.f32.mxu0 %vm68_vm0, %v52_v16  ;;  %852 = vmatpush3.bf16.msra.mxu0 %v849_v14 }
  0x14   :  { %753 = vmatmul.mubr.msk.f32.gmra.mrb[4].mxu0 %vm68_vm0, %v53_v17 }
  0x15   :  { %755 = vmatprep.mubr.msk.f32.mxu0 %vm68_vm0, %v54_v18 }
  0x18   :  { %756 = vmatmul.mubr.msk.f32.gmra.mrb[6].mxu0 %vm68_vm0, %v55_v19 }
  0x19   :  { %758 = vmatprep.mubr.msk.f32.mxu0 %vm68_vm0, %v56_v20 }
  0x1c   :  { %759 = vmatmul.mubr.msk.f32.gmra.mrb[8].mxu0 %vm68_vm0, %v57_v21 }
  0x1d   :  { %761 = vmatprep.mubr.msk.f32.mxu0 %vm68_vm0, %v58_v22 }
  0x20   :  { %762 = vmatmul.mubr.msk.f32.gmra.mrb[10].mxu0 %vm68_vm0, %v59_v23 }
  0x21   :  { %764 = vmatprep.mubr.msk.f32.mxu0 %vm68_vm0, %v60_v24 }
  0x24   :  { %765 = vmatmul.mubr.msk.f32.gmra.mrb[12].mxu0 %vm68_vm0, %v61_v25 }
  0x25   :  { %767 = vmatprep.mubr.msk.f32.mxu0 %vm68_vm0, %v62_v26 }
  0x28   :  { %768 = vmatmul.mubr.msk.f32.gmra.mrb[14].mxu0 %vm68_vm0, %v63_v27 }
  0x29   :  { %778 = vmatprep.mubr.msk.f32.mxu0 %vm68_vm0, %v28_v28 }
  0x2c   :  { %779 = vmatmul.mubr.msk.f32.vlgmr.msra.gmra.mrb[0].mxu0 %vm68_vm0, %v29_v29 }
  0x2d   :  { %781 = vmatprep.mubr.msk.f32.mxu0 %vm68_vm0, %v30_v30 }
  0x30   :  { %782 = vmatmul.mubr.msk.f32.gmra.mrb[2].mxu0 %vm68_vm0, %v31_v31 }
  0x31   :  { %784 = vmatprep.mubr.msk.f32.mxu0 %vm68_vm0, %v32_v32 }
  0x34   :  { %785 = vmatmul.mubr.msk.f32.gmra.mrb[4].mxu0 %vm68_vm0, %v33_v33 }
  0x35   :  { %787 = vmatprep.mubr.msk.f32.mxu0 %vm68_vm0, %v34_v34 }
  0x38   :  { %788 = vmatmul.mubr.msk.f32.gmra.mrb[6].mxu0 %vm68_vm0, %v35_v35 }
  0x39   :  { %790 = vmatprep.mubr.msk.f32.mxu0 %vm68_vm0, %v36_v36 }
  0x3c   :  { %791 = vmatmul.mubr.msk.f32.gmra.mrb[8].mxu0 %vm68_vm0, %v37_v37 }
  0x3d   :  { %793 = vmatprep.mubr.msk.f32.mxu0 %vm68_vm0, %v38_v38 }
  0x40   :  { %794 = vmatmul.mubr.msk.f32.gmra.mrb[10].mxu0 %vm68_vm0, %v39_v39 }
  0x41   :  { %796 = vmatprep.mubr.msk.f32.mxu0 %vm68_vm0, %v40_v40 }
  0x44   :  { %797 = vmatmul.mubr.msk.f32.gmra.mrb[12].mxu0 %vm68_vm0, %v41_v41 }
  0x45   :  { %799 = vmatprep.mubr.msk.f32.mxu0 %vm68_vm0, %v42_v42 }
  0x48   :  { %800 = vmatmul.mubr.msk.f32.gmra.mrb[14].mxu0 %vm68_vm0, %v43_v43  ;;  %v494_v43 = vld [vmem:[%s1151_s5] sm:$0x1] }
  0x8e   :  { %v499_v48 = vpop.permute.xlu0 %498 }
  0xff   :  { %v780_v50 = vpop.f32.mrb[0].mxu0 }
 0x100   :  { %v463_v51 = vadd.f32 %v780_v50, %v663_v49  ;;  %v376_v52 = vpop.f32.mrb[1].mxu0 }
 0x101   :  { %v462_v53 = vadd.f32 %v663_v49, %v376_v52 }
 0x102   :  { %v479_v54 = vmax.f32 %v463_v51, 0.0 }
 0x103   :  { %v478_v55 = vmax.f32 %v462_v53, 0.0  ;;  %v783_v56 = vpop.f32.mrb[2].mxu0 }
 0x104   :  { %v465_v57 = vadd.f32 %v783_v56, %v663_v49  ;;  %v386_v58 = vpop.f32.mrb[3].mxu0 }
 0x105   :  { %v854_v60 = vpack.c.bf16 %v479_v54, %v478_v55  ;;  %v464_v61 = vadd.f32 %v663_v49, %v386_v58 }
 0x106   :  { %v481_v62 = vmax.f32 %v465_v57, 0.0 }
 0x107   :  { %v480_v63 = vmax.f32 %v464_v61, 0.0  ;;  %v786_v0 = vpop.f32.mrb[4].mxu0  ;;  %856 = vmatpush3.bf16.xpose.msk.msra.mxu1 %vm1111_vm2, %v854_v60 }
 0x108   :  { %v467_v1 = vadd.f32 %v786_v0, %v663_v49  ;;  %v396_v2 = vpop.f32.mrb[5].mxu0  ;;  %857 = vmatprep.subr.bf16.mxu1 %v906_v44 }
 0x109   :  { %v858_v3 = vpack.c.bf16 %v481_v62, %v480_v63  ;;  %v466_v4 = vadd.f32 %v663_v49, %v396_v2 }
 0x10a   :  { %v483_v5 = vmax.f32 %v467_v1, 0.0 }
 0x10b   :  { %v482_v6 = vmax.f32 %v466_v4, 0.0  ;;  %v789_v7 = vpop.f32.mrb[6].mxu0 }
 0x10c   :  { %v469_v8 = vadd.f32 %v789_v7, %v663_v49  ;;  %v406_v9 = vpop.f32.mrb[7].mxu0 }
 0x10d   :  { %v862_v10 = vpack.c.bf16 %v483_v5, %v482_v6  ;;  %v468_v11 = vadd.f32 %v663_v49, %v406_v9 }
 0x10e   :  { %v485_v12 = vmax.f32 %v469_v8, 0.0 }
 0x10f   :  { %v484_v13 = vmax.f32 %v468_v11, 0.0  ;;  %v792_v14 = vpop.f32.mrb[8].mxu0  ;;  %860 = vmatpush3.bf16.xpose.msk.msra.mxu1 %vm1111_vm2, %v858_v3 }
 0x110   :  { %v471_v15 = vadd.f32 %v792_v14, %v663_v49  ;;  %v416_v16 = vpop.f32.mrb[9].mxu0  ;;  %861 = vmatprep.subr.bf16.mxu1 %v906_v44 }
 0x111   :  { %v866_v17 = vpack.c.bf16 %v485_v12, %v484_v13  ;;  %v470_v18 = vadd.f32 %v663_v49, %v416_v16 }
 0x112   :  { %v487_v19 = vmax.f32 %v471_v15, 0.0 }
 0x113   :  { %v486_v20 = vmax.f32 %v470_v18, 0.0  ;;  %v795_v21 = vpop.f32.mrb[10].mxu0 }
 0x114   :  { %v473_v22 = vadd.f32 %v795_v21, %v663_v49  ;;  %v426_v23 = vpop.f32.mrb[11].mxu0 }
 0x115   :  { %v870_v24 = vpack.c.bf16 %v487_v19, %v486_v20  ;;  %v472_v25 = vadd.f32 %v663_v49, %v426_v23 }
 0x116   :  { %v489_v26 = vmax.f32 %v473_v22, 0.0 }
 0x117   :  { %v488_v27 = vmax.f32 %v472_v25, 0.0  ;;  %v798_v28 = vpop.f32.mrb[12].mxu0  ;;  %864 = vmatpush3.bf16.xpose.msk.msra.mxu1 %vm1111_vm2, %v862_v10 }
 0x118   :  { %v475_v29 = vadd.f32 %v798_v28, %v663_v49  ;;  %v436_v30 = vpop.f32.mrb[13].mxu0  ;;  %865 = vmatprep.subr.bf16.mxu1 %v906_v44 }
 0x119   :  { %v874_v31 = vpack.c.bf16 %v489_v26, %v488_v27  ;;  %v474_v32 = vadd.f32 %v663_v49, %v436_v30 }
 0x11a   :  { %v491_v33 = vmax.f32 %v475_v29, 0.0 }
 0x11b   :  { %v490_v34 = vmax.f32 %v474_v32, 0.0  ;;  %v801_v35 = vpop.f32.mrb[14].mxu0 }
 0x11c   :  { %v477_v36 = vadd.f32 %v801_v35, %v663_v49  ;;  %v446_v37 = vpop.f32.mrb[15].mxu0 }
 0x11d   :  { %v878_v38 = vpack.c.bf16 %v491_v33, %v490_v34  ;;  %v476_v39 = vadd.f32 %v663_v49, %v446_v37  ;;  %v504_v49 = vrot.slane %v499_v48, %v503_v47 }
 0x11e   :  { %v493_v40 = vmax.f32 %v477_v36, 0.0 }
 0x11f   :  { %v492_v41 = vmax.f32 %v476_v39, 0.0  ;;  %868 = vmatpush3.bf16.xpose.msk.msra.mxu1 %vm1111_vm2, %v866_v17 }
 0x120   :  { %869 = vmatprep.subr.bf16.mxu1 %v906_v44 }
 0x121   :  { %v882_v42 = vpack.c.bf16 %v493_v40, %v492_v41 }
 0x127   :  { %872 = vmatpush3.bf16.xpose.msk.msra.mxu1 %vm1111_vm2, %v870_v24 }
 0x128   :  { %873 = vmatprep.subr.bf16.mxu1 %v906_v44 }
 0x12f   :  { %876 = vmatpush3.bf16.xpose.msk.msra.mxu1 %vm1111_vm2, %v874_v31 }
 0x130   :  { %877 = vmatprep.subr.bf16.mxu1 %v906_v44 }
 0x137   :  { %880 = vmatpush3.bf16.xpose.msk.msra.mxu1 %vm1111_vm2, %v878_v38 }
 0x138   :  { %881 = vmatprep.subr.bf16.mxu1 %v906_v44 }
 0x13f   :  { %884 = vmatpush3.bf16.xpose.msk.msra.mxu1 %vm1111_vm2, %v882_v42 }
 0x146   :  { %835 = vmatmul.mubr.msk.f32.vlgmr.msra.gmra.mrb[0].mxu1 %vm68_vm0, %v494_v43 }
 0x219   :  { %v622_v50 = vpop.f32.mrb[0].mxu1 }
 0x21a   :  { %v623_v51 = vadd.f32 %v622_v50, %v504_v49  ;;  %v836_v52 = vpop.f32.mrb[1].mxu1 }
 0x21c   :  { %626 = vst [vmem:[%s1152_s7] sm:$0x1] %v623_v51 }

</bundles_post_ra>
